<compile_context>
chip_gen: v7x
topology: tpu7x:2x2x1
jax: 0.10.0
libtpu: 0.0.40
codegen_flags: <defaults>
</compile_context>

<pallas_src>
import jax
import jax.numpy as jnp
from jax.experimental import pallas as pl
from jax.experimental.pallas import tpu as pltpu


def _round_up(x, m):
    return (x + m - 1) // m * m


# ---------------------------------------------------------------------------
# LSTM layer kernel
# ---------------------------------------------------------------------------
def _lstm_kernel(x_ref, wih_ref, whh_ref, b_ref, o_ref, h_sc, c_sc):
    t = pl.program_id(0)

    @pl.when(t == 0)
    def _init():
        h_sc[...] = jnp.zeros_like(h_sc)
        c_sc[...] = jnp.zeros_like(c_sc)

    x_t = x_ref[...].astype(jnp.float32)      # (B, Din)
    h_prev = h_sc[...]                        # (B, H)

    def gate(k):  # per-gate weights avoid lane-slicing a stacked 4H matmul
        return (
            jnp.dot(x_t, wih_ref[k], preferred_element_type=jnp.float32)
            + jnp.dot(h_prev, whh_ref[k], preferred_element_type=jnp.float32)
            + b_ref[k]
        )

    i_g = jax.nn.sigmoid(gate(0))
    f_g = jax.nn.sigmoid(gate(1))
    g_g = jnp.tanh(gate(2))
    o_g = jax.nn.sigmoid(gate(3))

    c_new = f_g * c_sc[...] + i_g * g_g
    h_new = o_g * jnp.tanh(c_new)
    c_sc[...] = c_new
    h_sc[...] = h_new
    o_ref[...] = h_new.astype(o_ref.dtype)


def lstm_pallas(x_tm, w_ih, w_hh, b):
    """Single-layer LSTM. x_tm: (S, B, Din) time-major -> (S, B, H)."""
    S, B, Din = x_tm.shape
    H = w_hh.shape[-1]
    return pl.pallas_call(
        _lstm_kernel,
        out_shape=jax.ShapeDtypeStruct((S, B, H), x_tm.dtype),
        grid=(S,),
        in_specs=[
            pl.BlockSpec((None, B, Din), lambda t: (t, 0, 0)),   # x_t per step
            pl.BlockSpec((4, Din, H), lambda t: (0, 0, 0)),      # resident W_ih
            pl.BlockSpec((4, H, H), lambda t: (0, 0, 0)),        # resident W_hh
            pl.BlockSpec((4, 1, H), lambda t: (0, 0, 0)),        # resident bias
        ],
        out_specs=pl.BlockSpec((None, B, H), lambda t: (t, 0, 0)),
        scratch_shapes=[
            pltpu.VMEM((B, H), jnp.float32),   # h state
            pltpu.VMEM((B, H), jnp.float32),   # c state
        ],
        compiler_params=pltpu.CompilerParams(
            dimension_semantics=("arbitrary",)),   # recurrence => sequential
    )(x_tm, w_ih, w_hh, b)


# ---------------------------------------------------------------------------
# TimeDistributed(Linear) kernel
# ---------------------------------------------------------------------------
def _linear_kernel(x_ref, w_ref, b_ref, o_ref):
    o_ref[...] = (
        jnp.dot(x_ref[...], w_ref[...], preferred_element_type=jnp.float32)
        + b_ref[...]
    ).astype(o_ref.dtype)


# Conservative budget that fits every generation's default scoped VMEM
# (16 MiB on v5e, 32 MiB on v6e/v7x; v7x physical VMEM is only 64 MiB).
_VMEM_BUDGET_BYTES = 16 * 1024 * 1024


def _linear_pallas(x2d, w, b):
    """x2d: (N, Fin), w: (Fin, Fout_p), b: (1, Fout_p) -> (N, Fout_p).

    Fout_p is lane-dense (multiple of 128). Rows are tiled and pipelined;
    weights/bias stay resident in VMEM across grid steps.
    """
    N, Fin = x2d.shape
    Fout_p = w.shape[1]
    itemsize = jnp.dtype(x2d.dtype).itemsize

    # Row tile: big tiles amortize the ~0.35us per-grid-step overhead, capped
    # by the VMEM budget (double-buffered x/y tiles + resident weights).
    w_bytes = (Fin * Fout_p + Fout_p) * itemsize
    per_row = 2 * (Fin + Fout_p) * itemsize
    tm_cap = max(8, ((_VMEM_BUDGET_BYTES - w_bytes) // per_row) // 8 * 8)
    tm = min(512, _round_up(N, 8), tm_cap)

    n_pad = _round_up(N, tm)
    if n_pad != N:
        x2d = jnp.pad(x2d, ((0, n_pad - N), (0, 0)))

    cost = pl.CostEstimate(
        flops=2 * n_pad * Fin * Fout_p,
        transcendentals=0,
        bytes_accessed=(n_pad * Fin + Fin * Fout_p + Fout_p + n_pad * Fout_p)
        * itemsize,
    )
    y = pl.pallas_call(
        _linear_kernel,
        out_shape=jax.ShapeDtypeStruct((n_pad, Fout_p), x2d.dtype),
        grid=(n_pad // tm,),
        in_specs=[
            pl.BlockSpec((tm, Fin), lambda i: (i, 0)),
            pl.BlockSpec((Fin, Fout_p), lambda i: (0, 0)),   # resident weights
            pl.BlockSpec((1, Fout_p), lambda i: (0, 0)),     # resident bias
        ],
        out_specs=pl.BlockSpec((tm, Fout_p), lambda i: (i, 0)),
        compiler_params=pltpu.CompilerParams(
            dimension_semantics=("parallel",)),   # independent row tiles
        cost_estimate=cost,
    )(x2d, w, b)
    return y[:N]


def time_distributed_linear(x, w, b, batch_first=False):
    """Mirrors TimeDistributed(nn.Linear(Fin, Fout)).forward(x)."""
    Fin, Fout = w.shape
    # Lane-dense output: pad Fout up to a multiple of 128 so output stores are
    # unmasked vst; slice the padding off afterwards (wrapper-side plumbing).
    fout_p = _round_up(Fout, 128)
    w_p = jnp.zeros((Fin, fout_p), w.dtype).at[:, :Fout].set(w)
    b_p = jnp.zeros((1, fout_p), b.dtype).at[0, :Fout].set(b.reshape(-1))

    if x.ndim <= 2:
        x2d = x if x.ndim == 2 else x[None, :]
        y = _linear_pallas(x2d, w_p, b_p)[:, :Fout]
        return y if x.ndim == 2 else y[0]

    x2d = x.reshape(-1, x.shape[-1])          # x.contiguous().view(-1, Fin)
    y = _linear_pallas(x2d, w_p, b_p)[:, :Fout]
    if batch_first:
        return y.reshape(x.shape[0], -1, Fout)
    return y.reshape(-1, x.shape[1], Fout)


# ---------------------------------------------------------------------------
# Decoder forward
# ---------------------------------------------------------------------------
def init_decoder_params(key, seq_len, input_dim, n_features,
                        dtype=jnp.float32):
    """Synthetic PyTorch-style LSTM/Linear init (not a checkpoint)."""
    hidden = 2 * input_dim
    ks = jax.random.split(key, 10)

    def u(k, shape, fan):
        bound = 1.0 / float(fan) ** 0.5
        return jax.random.uniform(k, shape, dtype, -bound, bound)

    # Per-gate layout (i, f, g, o): w_ih (4, Din, H), w_hh (4, H, H), b (4,1,H)
    return dict(
        seq_len=seq_len, input_dim=input_dim, n_features=n_features,
        w_ih1=u(ks[0], (4, input_dim, input_dim), input_dim),
        w_hh1=u(ks[1], (4, input_dim, input_dim), input_dim),
        b1=u(ks[2], (4, 1, input_dim), input_dim)
           + u(ks[3], (4, 1, input_dim), input_dim),          # b_ih + b_hh
        w_ih2=u(ks[4], (4, input_dim, hidden), hidden),
        w_hh2=u(ks[5], (4, hidden, hidden), hidden),
        b2=u(ks[6], (4, 1, hidden), hidden)
           + u(ks[7], (4, 1, hidden), hidden),
        w_out=u(ks[8], (hidden, n_features), hidden),
        b_out=u(ks[9], (n_features,), hidden),
    )


def decoder_forward(x, params):
    """Matches Decoder.forward(x): reshape+repeat -> rnn1 -> rnn2 -> timedist."""
    S = params["seq_len"]
    D = params["input_dim"]
    lat = x.reshape(-1, D)                                  # (B, D)
    B = lat.shape[0]
    # x.reshape(-1, 1, D).repeat(1, S, 1), laid out time-major for the kernels.
    x_tm = jnp.broadcast_to(lat[None, :, :], (S, B, D))
    h1 = lstm_pallas(x_tm, params["w_ih1"], params["w_hh1"], params["b1"])
    h2 = lstm_pallas(h1, params["w_ih2"], params["w_hh2"], params["b2"])
    # Back to batch-first (B, S, 2D) like the PyTorch LSTM(batch_first) output.
    h2_bf = jnp.transpose(h2, (1, 0, 2))
    return time_distributed_linear(h2_bf, params["w_out"], params["b_out"],
                                   batch_first=False)


# ---------------------------------------------------------------------------
# Pure-JAX reference (same math as the PyTorch forward)
# ---------------------------------------------------------------------------
def _lstm_ref(x_bf, w_ih, w_hh, b):
    B, S, _ = x_bf.shape
    H = w_hh.shape[-1]
    h = jnp.zeros((B, H), jnp.float32)
    c = jnp.zeros((B, H), jnp.float32)
    ys = []
    for t in range(S):
        xt = x_bf[:, t, :]
        g = [xt @ w_ih[k] + h @ w_hh[k] + b[k] for k in range(4)]
        i = jax.nn.sigmoid(g[0])
        f = jax.nn.sigmoid(g[1])
        gg = jnp.tanh(g[2])
        o = jax.nn.sigmoid(g[3])
        c = f * c + i * gg
        h = o * jnp.tanh(c)
        ys.append(h)
    return jnp.stack(ys, axis=1)   # (B, S, H)


if __name__ == "__main__":
    SEQ_LEN, INPUT_DIM, N_FEATURES, BATCH = 8, 32, 1, 2

    key = jax.random.PRNGKey(0)
    kp, kx = jax.random.split(key)
    params = init_decoder_params(kp, SEQ_LEN, INPUT_DIM, N_FEATURES)
    x = jax.random.normal(kx, (BATCH, INPUT_DIM), dtype=jnp.float32)

    y = decoder_forward(x, params)
    y = jax.block_until_ready(y)
    assert y.shape == (BATCH, SEQ_LEN, N_FEATURES), y.shape

    # Reference check.
    lat = x.reshape(-1, INPUT_DIM)
    x_rep = jnp.broadcast_to(lat[:, None, :], (BATCH, SEQ_LEN, INPUT_DIM))
    r1 = _lstm_ref(x_rep, params["w_ih1"], params["w_hh1"], params["b1"])
    r2 = _lstm_ref(r1, params["w_ih2"], params["w_hh2"], params["b2"])
    ref = (r2.reshape(-1, 2 * INPUT_DIM) @ params["w_out"] + params["b_out"])
    ref = ref.reshape(-1, SEQ_LEN, N_FEATURES)
    # Tolerance absorbs f32-matmul precision-policy differences between the
    # Mosaic kernel and the XLA reference path.
    err = float(jnp.max(jnp.abs(y - ref)))
    assert jnp.allclose(y, ref, atol=5e-3, rtol=5e-3), ("mismatch", err)

    print("KERNEL_OK")
</pallas_src>

<mosaic_0001>
module attributes {stable_mosaic.version = 11 : i64} {
  func.func @_lstm_kernel(%arg0: i32, %arg1: memref<1x2x32xf32, #tpu.memory_space<vmem>>, %arg2: memref<4x32x32xf32, #tpu.memory_space<vmem>>, %arg3: memref<4x32x32xf32, #tpu.memory_space<vmem>>, %arg4: memref<4x1x32xf32, #tpu.memory_space<vmem>>, %arg5: memref<1x2x32xf32, #tpu.memory_space<vmem>>, %arg6: memref<2x32xf32, #tpu.memory_space<vmem>>, %arg7: memref<2x32xf32, #tpu.memory_space<vmem>>) attributes {dimension_semantics = [#tpu.dimension_semantics<arbitrary>], iteration_bounds = array<i64: 8>, scalar_prefetch = 0 : i64, scratch_operands = 2 : i64, tpu.core_type = #tpu.core_type<tc>, window_params = [{transform_indices = @transform_0, window_bounds = array<i64: 1, 2, 32>}, {pipeline_mode = #tpu.pipeline_mode<synchronous>, transform_indices = @transform_1, window_bounds = array<i64: 4, 32, 32>}, {pipeline_mode = #tpu.pipeline_mode<synchronous>, transform_indices = @transform_2, window_bounds = array<i64: 4, 32, 32>}, {pipeline_mode = #tpu.pipeline_mode<synchronous>, transform_indices = @transform_3, window_bounds = array<i64: 4, 1, 32>}, {transform_indices = @transform_4, window_bounds = array<i64: 1, 2, 32>}]} {
    %c0_i32 = arith.constant 0 : i32
    %0 = arith.cmpi eq, %arg0, %c0_i32 : i32
    %1 = arith.extui %0 : i1 to i32
    %c0_i32_0 = arith.constant 0 : i32
    %2 = arith.cmpi ne, %1, %c0_i32_0 : i32
    scf.if %2 {
      %cst_57 = arith.constant 0.000000e+00 : f32
      %77 = vector.broadcast %cst_57 : f32 to vector<2x32xf32>
      %c0_58 = arith.constant 0 : index
      %c0_59 = arith.constant 0 : index
      %78 = vector.load %arg6[%c0_58, %c0_59] : memref<2x32xf32, #tpu.memory_space<vmem>>, vector<2x32xf32>
      tpu.vector_store %arg6[%c0_58, %c0_59], %77 {strides = array<i32>} : memref<2x32xf32, #tpu.memory_space<vmem>>, vector<2x32xf32>,
      %cst_60 = arith.constant 0.000000e+00 : f32
      %79 = vector.broadcast %cst_60 : f32 to vector<2x32xf32>
      %c0_61 = arith.constant 0 : index
      %c0_62 = arith.constant 0 : index
      %80 = vector.load %arg7[%c0_61, %c0_62] : memref<2x32xf32, #tpu.memory_space<vmem>>, vector<2x32xf32>
      tpu.vector_store %arg7[%c0_61, %c0_62], %79 {strides = array<i32>} : memref<2x32xf32, #tpu.memory_space<vmem>>, vector<2x32xf32>,
    } else {
    }
    %c0 = arith.constant 0 : index
    %c0_1 = arith.constant 0 : index
    %c0_2 = arith.constant 0 : index
    %3 = vector.load %arg1[%c0, %c0_1, %c0_2] : memref<1x2x32xf32, #tpu.memory_space<vmem>>, vector<1x2x32xf32>
    %4 = vector.shape_cast %3 : vector<1x2x32xf32> to vector<2x32xf32>
    %c0_3 = arith.constant 0 : index
    %c0_4 = arith.constant 0 : index
    %5 = vector.load %arg6[%c0_3, %c0_4] : memref<2x32xf32, #tpu.memory_space<vmem>>, vector<2x32xf32>
    %c0_5 = arith.constant 0 : index
    %c0_6 = arith.constant 0 : index
    %c0_7 = arith.constant 0 : index
    %6 = vector.load %arg2[%c0_5, %c0_6, %c0_7] : memref<4x32x32xf32, #tpu.memory_space<vmem>>, vector<1x32x32xf32>
    %7 = vector.shape_cast %6 : vector<1x32x32xf32> to vector<32x32xf32>
    %cst = arith.constant dense<0.000000e+00> : vector<2x32xf32>
    %8 = tpu.matmul %4, %7, %cst {dimension_numbers = #tpu.dot_dimension_numbers<[1], [0], [0], [1], [0, 0, 1, 1], [], []>} : vector<2x32xf32>, vector<32x32xf32>, vector<2x32xf32> -> vector<2x32xf32>
    %c0_8 = arith.constant 0 : index
    %c0_9 = arith.constant 0 : index
    %c0_10 = arith.constant 0 : index
    %9 = vector.load %arg3[%c0_8, %c0_9, %c0_10] : memref<4x32x32xf32, #tpu.memory_space<vmem>>, vector<1x32x32xf32>
    %10 = vector.shape_cast %9 : vector<1x32x32xf32> to vector<32x32xf32>
    %cst_11 = arith.constant dense<0.000000e+00> : vector<2x32xf32>
    %11 = tpu.matmul %5, %10, %cst_11 {dimension_numbers = #tpu.dot_dimension_numbers<[1], [0], [0], [1], [0, 0, 1, 1], [], []>} : vector<2x32xf32>, vector<32x32xf32>, vector<2x32xf32> -> vector<2x32xf32>
    %12 = arith.addf %8, %11 : vector<2x32xf32>
    %c0_12 = arith.constant 0 : index
    %c0_13 = arith.constant 0 : index
    %c0_14 = arith.constant 0 : index
    %13 = vector.load %arg4[%c0_12, %c0_13, %c0_14] : memref<4x1x32xf32, #tpu.memory_space<vmem>>, vector<1x1x32xf32>
    %14 = vector.shape_cast %13 : vector<1x1x32xf32> to vector<1x32xf32>
    %15 = vector.broadcast %14 : vector<1x32xf32> to vector<2x32xf32>
    %16 = arith.addf %12, %15 : vector<2x32xf32>
    %17 = arith.negf %16 : vector<2x32xf32>
    %18 = math.exp %17 : vector<2x32xf32>
    %cst_15 = arith.constant 1.000000e+00 : f32
    %19 = vector.broadcast %cst_15 : f32 to vector<2x32xf32>
    %20 = arith.addf %19, %18 : vector<2x32xf32>
    %21 = arith.divf %19, %20 : vector<2x32xf32>
    %c1 = arith.constant 1 : index
    %c0_16 = arith.constant 0 : index
    %c0_17 = arith.constant 0 : index
    %22 = vector.load %arg2[%c1, %c0_16, %c0_17] : memref<4x32x32xf32, #tpu.memory_space<vmem>>, vector<1x32x32xf32>
    %23 = vector.shape_cast %22 : vector<1x32x32xf32> to vector<32x32xf32>
    %cst_18 = arith.constant dense<0.000000e+00> : vector<2x32xf32>
    %24 = tpu.matmul %4, %23, %cst_18 {dimension_numbers = #tpu.dot_dimension_numbers<[1], [0], [0], [1], [0, 0, 1, 1], [], []>} : vector<2x32xf32>, vector<32x32xf32>, vector<2x32xf32> -> vector<2x32xf32>
    %c1_19 = arith.constant 1 : index
    %c0_20 = arith.constant 0 : index
    %c0_21 = arith.constant 0 : index
    %25 = vector.load %arg3[%c1_19, %c0_20, %c0_21] : memref<4x32x32xf32, #tpu.memory_space<vmem>>, vector<1x32x32xf32>
    %26 = vector.shape_cast %25 : vector<1x32x32xf32> to vector<32x32xf32>
    %cst_22 = arith.constant dense<0.000000e+00> : vector<2x32xf32>
    %27 = tpu.matmul %5, %26, %cst_22 {dimension_numbers = #tpu.dot_dimension_numbers<[1], [0], [0], [1], [0, 0, 1, 1], [], []>} : vector<2x32xf32>, vector<32x32xf32>, vector<2x32xf32> -> vector<2x32xf32>
    %28 = arith.addf %24, %27 : vector<2x32xf32>
    %c1_23 = arith.constant 1 : index
    %c0_24 = arith.constant 0 : index
    %c0_25 = arith.constant 0 : index
    %29 = vector.load %arg4[%c1_23, %c0_24, %c0_25] : memref<4x1x32xf32, #tpu.memory_space<vmem>>, vector<1x1x32xf32>
    %30 = vector.shape_cast %29 : vector<1x1x32xf32> to vector<1x32xf32>
    %31 = vector.broadcast %30 : vector<1x32xf32> to vector<2x32xf32>
    %32 = arith.addf %28, %31 : vector<2x32xf32>
    %33 = arith.negf %32 : vector<2x32xf32>
    %34 = math.exp %33 : vector<2x32xf32>
    %cst_26 = arith.constant 1.000000e+00 : f32
    %35 = vector.broadcast %cst_26 : f32 to vector<2x32xf32>
    %36 = arith.addf %35, %34 : vector<2x32xf32>
    %37 = arith.divf %35, %36 : vector<2x32xf32>
    %c2 = arith.constant 2 : index
    %c0_27 = arith.constant 0 : index
    %c0_28 = arith.constant 0 : index
    %38 = vector.load %arg2[%c2, %c0_27, %c0_28] : memref<4x32x32xf32, #tpu.memory_space<vmem>>, vector<1x32x32xf32>
    %39 = vector.shape_cast %38 : vector<1x32x32xf32> to vector<32x32xf32>
    %cst_29 = arith.constant dense<0.000000e+00> : vector<2x32xf32>
    %40 = tpu.matmul %4, %39, %cst_29 {dimension_numbers = #tpu.dot_dimension_numbers<[1], [0], [0], [1], [0, 0, 1, 1], [], []>} : vector<2x32xf32>, vector<32x32xf32>, vector<2x32xf32> -> vector<2x32xf32>
    %c2_30 = arith.constant 2 : index
    %c0_31 = arith.constant 0 : index
    %c0_32 = arith.constant 0 : index
    %41 = vector.load %arg3[%c2_30, %c0_31, %c0_32] : memref<4x32x32xf32, #tpu.memory_space<vmem>>, vector<1x32x32xf32>
    %42 = vector.shape_cast %41 : vector<1x32x32xf32> to vector<32x32xf32>
    %cst_33 = arith.constant dense<0.000000e+00> : vector<2x32xf32>
    %43 = tpu.matmul %5, %42, %cst_33 {dimension_numbers = #tpu.dot_dimension_numbers<[1], [0], [0], [1], [0, 0, 1, 1], [], []>} : vector<2x32xf32>, vector<32x32xf32>, vector<2x32xf32> -> vector<2x32xf32>
    %44 = arith.addf %40, %43 : vector<2x32xf32>
    %c2_34 = arith.constant 2 : index
    %c0_35 = arith.constant 0 : index
    %c0_36 = arith.constant 0 : index
    %45 = vector.load %arg4[%c2_34, %c0_35, %c0_36] : memref<4x1x32xf32, #tpu.memory_space<vmem>>, vector<1x1x32xf32>
    %46 = vector.shape_cast %45 : vector<1x1x32xf32> to vector<1x32xf32>
    %47 = vector.broadcast %46 : vector<1x32xf32> to vector<2x32xf32>
    %48 = arith.addf %44, %47 : vector<2x32xf32>
    %49 = math.tanh %48 : vector<2x32xf32>
    %c3 = arith.constant 3 : index
    %c0_37 = arith.constant 0 : index
    %c0_38 = arith.constant 0 : index
    %50 = vector.load %arg2[%c3, %c0_37, %c0_38] : memref<4x32x32xf32, #tpu.memory_space<vmem>>, vector<1x32x32xf32>
    %51 = vector.shape_cast %50 : vector<1x32x32xf32> to vector<32x32xf32>
    %cst_39 = arith.constant dense<0.000000e+00> : vector<2x32xf32>
    %52 = tpu.matmul %4, %51, %cst_39 {dimension_numbers = #tpu.dot_dimension_numbers<[1], [0], [0], [1], [0, 0, 1, 1], [], []>} : vector<2x32xf32>, vector<32x32xf32>, vector<2x32xf32> -> vector<2x32xf32>
    %c3_40 = arith.constant 3 : index
    %c0_41 = arith.constant 0 : index
    %c0_42 = arith.constant 0 : index
    %53 = vector.load %arg3[%c3_40, %c0_41, %c0_42] : memref<4x32x32xf32, #tpu.memory_space<vmem>>, vector<1x32x32xf32>
    %54 = vector.shape_cast %53 : vector<1x32x32xf32> to vector<32x32xf32>
    %cst_43 = arith.constant dense<0.000000e+00> : vector<2x32xf32>
    %55 = tpu.matmul %5, %54, %cst_43 {dimension_numbers = #tpu.dot_dimension_numbers<[1], [0], [0], [1], [0, 0, 1, 1], [], []>} : vector<2x32xf32>, vector<32x32xf32>, vector<2x32xf32> -> vector<2x32xf32>
    %56 = arith.addf %52, %55 : vector<2x32xf32>
    %c3_44 = arith.constant 3 : index
    %c0_45 = arith.constant 0 : index
    %c0_46 = arith.constant 0 : index
    %57 = vector.load %arg4[%c3_44, %c0_45, %c0_46] : memref<4x1x32xf32, #tpu.memory_space<vmem>>, vector<1x1x32xf32>
    %58 = vector.shape_cast %57 : vector<1x1x32xf32> to vector<1x32xf32>
    %59 = vector.broadcast %58 : vector<1x32xf32> to vector<2x32xf32>
    %60 = arith.addf %56, %59 : vector<2x32xf32>
    %61 = arith.negf %60 : vector<2x32xf32>
    %62 = math.exp %61 : vector<2x32xf32>
    %cst_47 = arith.constant 1.000000e+00 : f32
    %63 = vector.broadcast %cst_47 : f32 to vector<2x32xf32>
    %64 = arith.addf %63, %62 : vector<2x32xf32>
    %65 = arith.divf %63, %64 : vector<2x32xf32>
    %c0_48 = arith.constant 0 : index
    %c0_49 = arith.constant 0 : index
    %66 = vector.load %arg7[%c0_48, %c0_49] : memref<2x32xf32, #tpu.memory_space<vmem>>, vector<2x32xf32>
    %67 = arith.mulf %37, %66 : vector<2x32xf32>
    %68 = arith.mulf %21, %49 : vector<2x32xf32>
    %69 = arith.addf %67, %68 : vector<2x32xf32>
    %70 = math.tanh %69 : vector<2x32xf32>
    %71 = arith.mulf %65, %70 : vector<2x32xf32>
    %c0_50 = arith.constant 0 : index
    %c0_51 = arith.constant 0 : index
    %72 = vector.load %arg7[%c0_50, %c0_51] : memref<2x32xf32, #tpu.memory_space<vmem>>, vector<2x32xf32>
    tpu.vector_store %arg7[%c0_50, %c0_51], %69 {strides = array<i32>} : memref<2x32xf32, #tpu.memory_space<vmem>>, vector<2x32xf32>,
    %c0_52 = arith.constant 0 : index
    %c0_53 = arith.constant 0 : index
    %73 = vector.load %arg6[%c0_52, %c0_53] : memref<2x32xf32, #tpu.memory_space<vmem>>, vector<2x32xf32>
    tpu.vector_store %arg6[%c0_52, %c0_53], %71 {strides = array<i32>} : memref<2x32xf32, #tpu.memory_space<vmem>>, vector<2x32xf32>,
    %c0_54 = arith.constant 0 : index
    %c0_55 = arith.constant 0 : index
    %c0_56 = arith.constant 0 : index
    %74 = vector.load %arg5[%c0_54, %c0_55, %c0_56] : memref<1x2x32xf32, #tpu.memory_space<vmem>>, vector<1x2x32xf32>
    %75 = vector.shape_cast %74 : vector<1x2x32xf32> to vector<2x32xf32>
    %76 = vector.shape_cast %71 : vector<2x32xf32> to vector<1x2x32xf32>
    tpu.vector_store %arg5[%c0_54, %c0_55, %c0_56], %76 {strides = array<i32>} : memref<1x2x32xf32, #tpu.memory_space<vmem>>, vector<1x2x32xf32>,
    return
  }
  func.func @transform_0(%arg0: i32) -> (i32, i32, i32) {
    %c0_i32 = arith.constant 0 : i32
    %c0_i32_0 = arith.constant 0 : i32
    %c0_i32_1 = arith.constant 0 : i32
    return %arg0, %c0_i32, %c0_i32_0 : i32, i32, i32
  }
  func.func @transform_1(%arg0: i32) -> (i32, i32, i32) {
    %c0_i32 = arith.constant 0 : i32
    %c0_i32_0 = arith.constant 0 : i32
    %c0_i32_1 = arith.constant 0 : i32
    %c0_i32_2 = arith.constant 0 : i32
    return %c0_i32, %c0_i32_0, %c0_i32_1 : i32, i32, i32
  }
  func.func @transform_2(%arg0: i32) -> (i32, i32, i32) {
    %c0_i32 = arith.constant 0 : i32
    %c0_i32_0 = arith.constant 0 : i32
    %c0_i32_1 = arith.constant 0 : i32
    %c0_i32_2 = arith.constant 0 : i32
    return %c0_i32, %c0_i32_0, %c0_i32_1 : i32, i32, i32
  }
  func.func @transform_3(%arg0: i32) -> (i32, i32, i32) {
    %c0_i32 = arith.constant 0 : i32
    %c0_i32_0 = arith.constant 0 : i32
    %c0_i32_1 = arith.constant 0 : i32
    %c0_i32_2 = arith.constant 0 : i32
    return %c0_i32, %c0_i32_0, %c0_i32_1 : i32, i32, i32
  }
  func.func @transform_4(%arg0: i32) -> (i32, i32, i32) {
    %c0_i32 = arith.constant 0 : i32
    %c0_i32_0 = arith.constant 0 : i32
    %c0_i32_1 = arith.constant 0 : i32
    return %arg0, %c0_i32, %c0_i32_0 : i32, i32, i32
  }
}

</mosaic_0001>

<bundles_post_ra>
// kernel: tpu_custom_call.1
= control target key start
LH: loop header
LB: loop body
LE: loop exit
PB: predicated region body
PF: predicated region fallthrough
CT: control target
= control target key end

     0   :  { %9 = vsyncpa [#allocation5], 0  ;;  %s1810_s0 = inlined_call_operand.hbm [shape: f32[8,2,32], index: 0, kind: input, shape index: {}]   ;;  %s1811_s1 = inlined_call_operand.hbm [shape: f32[4,32,32], index: 1, kind: input, shape index: {}]   ;;  %s1812_s2 = inlined_call_operand.hbm [shape: f32[4,32,32], index: 2, kind: input, shape index: {}]   ;;  %s1813_s3 = inlined_call_operand.vmem [shape: f32[4,1,32], index: 3, kind: input, shape index: {}]   ;;  %s1814_s4 = inlined_call_operand.hbm [shape: f32[8,2,32], index: 4, kind: output, shape index: {}]  }
   0x1   :  { %11 = vsyncpa [#allocation5 + $0x1], 0 }
   0x2   :  { %12 = vsyncpa [#allocation8], 0 }
   0x3   :  { %13 = vsyncpa [#allocation6], 0 }
   0x4   :  { %15 = vsyncpa [#allocation6 + $0x1], 0  ;;  %s1516_s15 = smov 0   ;;  %s1518_s16 = smov 0  }
   0x5   :  { %s1520_s17 = smov 0   ;;  %s1522_s18 = smov 0  }
   0x6 LB: > { %s1537_s19 = sadd.s32 4294967295, %s1479_s18   ;;  %s1023_s20 = sadd.s32 4294967294, %s1479_s18   ;;  %s1479_s18 = sphi %s1522_s18, %s1834_s18   ;;  %s1475_s17 = sphi %s1520_s17, %s1833_s17   ;;  %s1471_s16 = sphi %s1518_s16, %s1832_s16   ;;  %s1467_s15 = sphi %s1516_s15, %s1831_s15  }
   0x7   : > { %p41_p0 = scmp.ne.s32.totalorder %s1471_s16, %s1467_s15  ;;  %p1815_p1 = scmp.eq.s32.totalorder %s1537_s19, 0 }
   0x8   : > { %p134_p3 = scmp.eq.s32.totalorder %s1023_s20, 7  ;;  %p1024_p5 = scmp.ge.s32.totalorder %s1479_s18, 1 }
   0x9   : > { %p1546_p4 = por %p1815_p1, %p41_p0  ;;  %p141_p7 = scmp.lt.s32.totalorder %s1479_s18, 9 }
   0xa   : > { %p1551_p6 = por %p134_p3, %p41_p0  ;;  %s1481_s24 = smov [#allocation7]  }
   0xb   : > { %s1818_s21 = scalar_select %p1546_p4, 1, 0 }
   0xc   : > { %s1819_s22 = scalar_select %p1551_p6, 1, 0 }
   0xd   : > { %p1557_p9 = pnand %p1024_p5, %p141_p7  ;;  %s153_s25 = sshll.u32 %s1481_s24, 4  ;;  %s154_s25 = int_to_ptr.vmem [resolvable:$true] %s153_s25 }
   0xe   : > { %s1482_s27 = smov [#allocation9]   ;;  %s1323_s5 = scalar_lea.hbm %s1811_s1, 2048 }
   0xf   : > { %s1820_s23 = scalar_select %p1557_p9, 1, 0 }
  0x10   : > { %p1246_p10 = pneg %p1557_p9  ;;  %s166_s28 = sshll.u32 %s1482_s27, 4  ;;  %s1569_s28 = int_to_ptr.vmem [resolvable:$true] %s166_s28 }
  0x11   : > { %p1324_p12 = scmp.ne.s32.totalorder %s1811_s1, %s1323_s5  ;;  %p1330_p5 = scmp.lt.u32.totalorder %s1323_s5, %s1811_s1 }
  0x12   : > { %p1565_p11 = pnand %p1246_p10, %p1815_p1 }
  0x14   : > { %p1325_p13 = pneg %p1565_p11 }
  0x16   : > { %p1326_p0 = pnand %p1325_p13, %p1324_p12 }
  0x18   : > { %p1327_p3 = pneg %p1326_p0 }
  0x1a   : > { %p1332_p7 = pnand %p1330_p5, %p1327_p3 }
  0x1c   : > { %1335 = shalt.err (!%p1332_p7)
}
  0x1d   : > { %s1336_s10 = scalar_lea.vmem %s154_s25, 2048  ;;  %p1344_p2 = scmp.lt.s32.totalorder %s154_s25, %s154_s25 }
  0x1e   : > { %p1337_p10 = scmp.ne.s32.totalorder %s154_s25, %s1336_s10  ;;  %p1345_p6 = scmp.lt.s32.totalorder %s1336_s10, %s1336_s10 }
  0x20   : > { %p1339_p8 = pnand %p1337_p10, %p1325_p13  ;;  %p1346_p4 = por %p1345_p6, %p1344_p2 }
  0x22   : > { %p1340_p1 = pneg %p1339_p8 }
  0x24   : > { %p1347_p9 = pnand %p1346_p4, %p1340_p1 }
  0x26   : > { %1350 = shalt.err (!%p1347_p9)
}
  0x27   : > { %s1483_s11 = smov 128   ;;  %s1484_s12 = smov 8  }
  0x28   : > { %1249 = dma.hbm_to_vmem [thread:$0]  (!%p1565_p11), %s1811_s1, 2048, %s154_s25, [#allocation8], %s1483_s11, %s1483_s11, %s1484_s12  }
  0x29   : > { %s1351_s27 = scalar_lea.hbm %s1812_s2, 2048 }
  0x2a   : > { %p1352_p8 = scmp.ne.s32.totalorder %s1812_s2, %s1351_s27  ;;  %p1358_p4 = scmp.lt.u32.totalorder %s1351_s27, %s1812_s2 }
  0x2c   : > { %p1354_p1 = pnand %p1352_p8, %p1325_p13 }
  0x2e   : > { %p1355_p2 = pneg %p1354_p1 }
  0x30   : > { %p1360_p6 = pnand %p1358_p4, %p1355_p2 }
  0x32   : > { %1363 = shalt.err (!%p1360_p6)
}
  0x33   : > { %s1364_s25 = scalar_lea.vmem %s1569_s28, 2048  ;;  %p1372_p3 = scmp.lt.s32.totalorder %s1569_s28, %s1569_s28 }
  0x34   : > { %p1365_p9 = scmp.ne.s32.totalorder %s1569_s28, %s1364_s25  ;;  %p1373_p5 = scmp.lt.s32.totalorder %s1364_s25, %s1364_s25 }
  0x36   : > { %p1367_p12 = pnand %p1365_p9, %p1325_p13  ;;  %p1374_p7 = por %p1373_p5, %p1372_p3 }
  0x38   : > { %p1368_p0 = pneg %p1367_p12 }
  0x3a   : > { %p1375_p10 = pnand %p1374_p7, %p1368_p0 }
  0x3c   : > { %1378 = shalt.err (!%p1375_p10)
}
  0x3d   : > { %1252 = dma.hbm_to_vmem [thread:$0]  (!%p1565_p11), %s1812_s2, 2048, %s1569_s28, [#allocation8], %s1483_s11, %s1483_s11, %s1484_s12  }
  0x3e   : > { %s1619_s9 = sadd.s32 1, %s1479_s18   ;;  %s28_s26 = sadd.s32 1, %s1475_s17 }
  0x3f   : > { %s25_s10 = ssub.s32 %s1479_s18, %s1619_s9  ;;  %p35_p13 = scmp.ne.s32.totalorder %s1475_s17, %s1471_s16 }
  0x40   : > { %p26_p8 = scmp.eq.s32.totalorder %s25_s10, 0  ;;  %p36_p1 = scmp.eq.s32.totalorder %s1479_s18, 0 }
  0x41   : > { %p1822_p2 = scmp.eq.s32.totalorder %s1537_s19, 7  ;;  %p1263_p6 = scmp.lt.s32.totalorder %s1479_s18, 8 }
  0x42   : > { %s1635_s14 = scalar_select %p26_p8, %s1475_s17, %s28_s26  }
  0x43   : > { %p1629_p4 = por %p1822_p2, %p35_p13  ;;  %p37_p9 = por %p36_p1, %p35_p13 }
  0x44   : > { %s183_s20 = sand.u32 1, %s1475_s17   ;;  %s1029_s28 = sshll.u32 %s1479_s18, 5 }
  0x45   : > { %s1028_s24 = sshll.u32 %s183_s20, 1  ;;  %s1642_s27 = scalar_lea.hbm %s1810_s0, %s1029_s28 }
  0x46   : > { %s187_s29 = scalar_lea.vmem [#allocation4], %s1028_s24  ;;  %p1646_p11 = pnand %p1263_p6, %p37_p9 }
  0x47   : > { %s194_s30 = sshll.u32 %s187_s29, 4  ;;  %s184_s6 = scalar_lea.sflag [#allocation5], %s183_s20  ;;  %s1644_s30 = int_to_ptr.vmem [resolvable:$true] %s194_s30 }
  0x48   : > { %s1379_s25 = scalar_lea.hbm %s1642_s27, 32  ;;  %p1381_p0 = pneg %p1646_p11 }
  0x49   : > { %p1380_p12 = scmp.ne.s32.totalorder %s1642_s27, %s1379_s25  ;;  %s1384_s26 = scalar_lea.hbm %s1810_s0, 256 }
  0x4a   : > { %p1385_p7 = scmp.lt.u32.totalorder %s1642_s27, %s1810_s0  ;;  %p1386_p10 = scmp.lt.u32.totalorder %s1384_s26, %s1379_s25 }
  0x4b   : > { %p1382_p3 = pnand %p1381_p0, %p1380_p12  ;;  %p1388_p8 = scmp.lt.u32.totalorder %s1379_s25, %s1642_s27 }
  0x4c   : > { %p1387_p13 = por %p1386_p10, %p1385_p7 }
  0x4d   : > { %p1383_p5 = pneg %p1382_p3 }
  0x4e   : > { %p1389_p1 = por %p1388_p8, %p1387_p13 }
  0x50   : > { %p1390_p2 = pnand %p1389_p1, %p1383_p5 }
  0x52   : > { %1393 = shalt.err (!%p1390_p2)
}
  0x53   : > { %s1394_s20 = scalar_lea.vmem %s1644_s30, 32  ;;  %s1485_s28 = smov [#allocation4]  }
  0x54   : > { %p1395_p6 = scmp.ne.s32.totalorder %s1644_s30, %s1394_s20  ;;  %s1399_s11 = sshll.u32 %s1485_s28, 4  ;;  %s1400_s11 = int_to_ptr.vmem [resolvable:$false] %s1399_s11 }
  0x55   : > { %s1401_s12 = scalar_lea.vmem %s1400_s11, 64  ;;  %p1402_p3 = scmp.lt.s32.totalorder %s1644_s30, %s1400_s11 }
  0x56   : > { %p1397_p9 = pnand %p1395_p6, %p1381_p0  ;;  %p1403_p7 = scmp.lt.s32.totalorder %s1401_s12, %s1394_s20 }
  0x58   : > { %p1398_p12 = pneg %p1397_p9  ;;  %p1404_p10 = por %p1403_p7, %p1402_p3 }
  0x5a   : > { %p1405_p13 = pnand %p1404_p10, %p1398_p12 }
  0x5c   : > { %1408 = shalt.err (!%p1405_p13)
}
  0x5d   : > { %1256 = dma.hbm_to_vmem [thread:$0]  (!%p1646_p11), %s1642_s27, 32, %s1644_s30, %s184_s6  }
  0x5e   : > { %p1825_p5 = scmp.ne.s32.totalorder %s1820_s23, 0 }
  0x5f   : > { %s1678_s29 = sand.u32 (!%p1825_p5), 1, %s1471_s16   ;;  %p1826_p0 = scmp.ne.s32.totalorder (!%p1825_p5), %s1818_s21, 0 }
  0x60   : > { %203 = sbr.rel (%p1825_p5) target bundleno = 409 (0x199), region = 36  ;;  %s1031_s25 = sshll.u32 (!%p1825_p5), %s1678_s29, 1 }
  0x61   : > { %s206_s7 = scalar_lea.sflag (!%p1825_p5), [#allocation5], %s1678_s29  ;;  %s1682_s8 = scalar_lea.vmem (!%p1825_p5), [#allocation4], %s1031_s25 }
  0x67   : > { %1454 = dma.done.wait (%p1826_p0), %s206_s7, 32  }
  0x68   : > { %1456 = vsyncadd (%p1826_p0), %s206_s7, 4294967264  ;;  %p1827_p11 = scmp.eq.s32.totalorder %s1537_s19, 0 }
  0x6a   : > { %1458 = dma.done.wait (%p1827_p11), [#allocation8], 4096   ;;  %p1828_p8 = pmov %p1827_p11 }
  0x6b   : > { %s1692_s23 = scalar_lea.vmem [#allocation10], %s1031_s25  ;;  %p1829_p1 = scmp.ne.s32.totalorder %s1537_s19, 0 }
  0x6c   : > { %1460 = vsyncadd (%p1828_p8), [#allocation8], 4294963200  ;;  %vm246_vm0 = vcmask (!%p1829_p1), 254976   ;;  %v1486_v0 = vmov (!%p1829_p1), 0.0  }
  0x6d   : > { %245 = sbr.rel (%p1829_p1) target bundleno = 116 (0x74), region = 52  ;;  %247 = vst.msk [vmem:[#allocation2] sm:$0x3] (!%p1829_p1), %vm246_vm0, %v1486_v0  ;;  %248 = vst.msk [vmem:[#allocation3] sm:$0x3] (!%p1829_p1), %vm246_vm0, %v1486_v0 }
  0x74 PF: > { %v255_v1 = vld [vmem:[#allocation9] sm:$0xff]  ;;  %v256_v2 = vld [vmem:[#allocation9 + $0x8] sm:$0xff]  ;;  %v1487_v4 = vmov 0.0|0.0   ;;  %v257_v7 = vld [vmem:[#allocation9 + $0x10] sm:$0xff]  ;;  %vm1488_vm1 = vmmov 0   ;;  %v1489_v12 = vmov 0.0  }
  0x75   : > { %v251_v3 = vld [vmem:[#allocation7] sm:$0xff]  ;;  %1186 = vmatprep.subr.bf16.mxu0 %v1487_v4  ;;  %1192 = vmatprep.subr.bf16.mxu1 %v1487_v4  ;;  %v1187_v5 = vpack.c.bf16 %v256_v2, %v255_v1  ;;  %v252_v6 = vld [vmem:[#allocation7 + $0x8] sm:$0xff]  ;;  %v258_v8 = vld [vmem:[#allocation9 + $0x18] sm:$0xff]  ;;  %vm259_vm2 = vcmask 261120   ;;  %vm916_vm3 = vcmask 254976   ;;  %s1055_s20 = sshll.u32 %s1537_s19, 5 }
  0x76   : > { %v1193_v9 = vpack.c.bf16 %v252_v6, %v251_v3  ;;  %v253_v10 = vld [vmem:[#allocation7 + $0x10] sm:$0xff]  ;;  %v254_v11 = vld [vmem:[#allocation7 + $0x18] sm:$0xff]  ;;  %1106 = vmatprep.mubr.msk.f32.mxu0 %vm1488_vm1, %v1489_v12  ;;  %1117 = vmatprep.mubr.msk.f32.mxu1 %vm1488_vm1, %v1489_v12  ;;  %v1190_v13 = vpack.c.bf16 %v258_v8, %v257_v7  ;;  %v426_v15 = vld [vmem:[#allocation9 + $0x20] sm:$0xff]  ;;  %s934_s28 = sshll.u32 %s1692_s23, 4  ;;  %s1766_s25 = scalar_lea.hbm %s1814_s4, %s1055_s20  ;;  %s1768_s28 = int_to_ptr.vmem [resolvable:$true] %s934_s28 }
  0x77   : > { %1188 = vmatpush3.bf16.msra.mxu0 %v1187_v5  ;;  %v1196_v14 = vpack.c.bf16 %v254_v11, %v253_v10  ;;  %v427_v16 = vld [vmem:[#allocation9 + $0x28] sm:$0xff]  ;;  %v421_v17 = vld [vmem:[#allocation7 + $0x20] sm:$0xff]  ;;  %v1704_v19 = vld [vmem:[#allocation2] sm:$0x3]  ;;  %s921_s7 = scalar_lea.sflag [#allocation6], %s1678_s29  ;;  %s1490_s19 = smov [#allocation10]  }
  0x78   : > { %1194 = vmatpush3.bf16.msra.mxu1 %v1193_v9  ;;  %1189 = vmatprep.subr.bf16.mxu0 %v1487_v4  ;;  %v422_v18 = vld [vmem:[#allocation7 + $0x28] sm:$0xff]  ;;  %v1199_v20 = vpack.c.bf16 %v427_v16, %v426_v15  ;;  %v1707_v21 = vld [vmem:[%s1682_s8] sm:$0x3]  ;;  %v428_v23 = vld [vmem:[#allocation9 + $0x30] sm:$0xff]  ;;  %s1409_s8 = scalar_lea.vmem %s1768_s28, 32  ;;  %s1413_s21 = sshll.u32 %s1490_s19, 4  ;;  %s1414_s21 = int_to_ptr.vmem [resolvable:$false] %s1413_s21 }
  0x79   : > { %1195 = vmatprep.subr.bf16.mxu1 %v1487_v4  ;;  %v1205_v22 = vpack.c.bf16 %v422_v18, %v421_v17  ;;  %v429_v24 = vld [vmem:[#allocation9 + $0x38] sm:$0xff]  ;;  %v423_v25 = vld [vmem:[#allocation7 + $0x30] sm:$0xff]  ;;  %v591_v29 = vld [vmem:[#allocation9 + $0x40] sm:$0xff]  ;;  %p1410_p2 = scmp.ne.s32.totalorder %s1768_s28, %s1409_s8  ;;  %s1415_s27 = scalar_lea.vmem %s1414_s21, 64 }
  0x7a   : > { %v424_v26 = vld [vmem:[#allocation7 + $0x38] sm:$0xff]  ;;  %v1202_v27 = vpack.c.bf16 %v429_v24, %v428_v23  ;;  %v592_v30 = vld [vmem:[#allocation9 + $0x48] sm:$0xff]  ;;  %v586_v31 = vld [vmem:[#allocation7 + $0x40] sm:$0xff]  ;;  %p1416_p12 = scmp.lt.s32.totalorder %s1768_s28, %s1414_s21  ;;  %p1417_p3 = scmp.lt.s32.totalorder %s1415_s27, %s1409_s8 }
  0x7b   : > { %1191 = vmatpush3.bf16.msra.mxu0 %v1190_v13  ;;  %v1208_v28 = vpack.c.bf16 %v424_v26, %v423_v25  ;;  %v587_v32 = vld [vmem:[#allocation7 + $0x48] sm:$0xff]  ;;  %v1211_v33 = vpack.c.bf16 %v592_v30, %v591_v29  ;;  %v593_v35 = vld [vmem:[#allocation9 + $0x50] sm:$0xff]  ;;  %v594_v36 = vld [vmem:[#allocation9 + $0x58] sm:$0xff]  ;;  %p1411_p6 = pnand %p1410_p2, %p1629_p4 }
  0x7c   : > { %1197 = vmatpush3.bf16.msra.mxu1 %v1196_v14  ;;  %1198 = vmatprep.subr.bf16.mxu0 %v1487_v4  ;;  %v1217_v34 = vpack.c.bf16 %v587_v32, %v586_v31  ;;  %v588_v37 = vld [vmem:[#allocation7 + $0x50] sm:$0xff]  ;;  %v589_v38 = vld [vmem:[#allocation7 + $0x58] sm:$0xff]  ;;  %v1214_v39 = vpack.c.bf16 %v594_v36, %v593_v35  ;;  %v751_v41 = vld [vmem:[#allocation9 + $0x60] sm:$0xff]  ;;  %p1418_p7 = por %p1417_p3, %p1416_p12 }
  0x7d   : > { %1204 = vmatprep.subr.bf16.mxu1 %v1487_v4  ;;  %v1220_v40 = vpack.c.bf16 %v589_v38, %v588_v37  ;;  %v752_v42 = vld [vmem:[#allocation9 + $0x68] sm:$0xff]  ;;  %v746_v43 = vld [vmem:[#allocation7 + $0x60] sm:$0xff]  ;;  %v753_v47 = vld [vmem:[#allocation9 + $0x70] sm:$0xff]  ;;  %p1412_p9 = pneg %p1411_p6 }
  0x7e   : > { %1107 = vmatmul.mubr.msk.f32.vlgmr.msra.gmra.mrb[0].mxu0 %vm259_vm2, %v1704_v19  ;;  %v747_v44 = vld [vmem:[#allocation7 + $0x68] sm:$0xff]  ;;  %v1223_v45 = vpack.c.bf16 %v752_v42, %v751_v41  ;;  %v754_v48 = vld [vmem:[#allocation9 + $0x78] sm:$0xff]  ;;  %v748_v49 = vld [vmem:[#allocation7 + $0x70] sm:$0xff] }
  0x7f   : > { %1118 = vmatmul.mubr.msk.f32.vlgmr.msra.gmra.mrb[0].mxu1 %vm259_vm2, %v1707_v21  ;;  %1200 = vmatpush3.bf16.msra.mxu0 %v1199_v20  ;;  %v1229_v46 = vpack.c.bf16 %v747_v44, %v746_v43  ;;  %v749_v50 = vld [vmem:[#allocation7 + $0x78] sm:$0xff]  ;;  %v1226_v51 = vpack.c.bf16 %v754_v48, %v753_v47  ;;  %p1419_p10 = pnand %p1418_p7, %p1412_p9 }
  0x80   : > { %1206 = vmatpush3.bf16.msra.mxu1 %v1205_v22  ;;  %1201 = vmatprep.subr.bf16.mxu0 %v1487_v4  ;;  %v1232_v52 = vpack.c.bf16 %v749_v50, %v748_v49  ;;  %v1038_v55 = vld [vmem:[%s1813_s3] ss:$0 sm:$0xff]  ;;  %v1043_v63 = vld [vmem:[%s1813_s3 + $0x1] ss:$0 sm:$0xff]  ;;  %v1048_v7 = vld [vmem:[%s1813_s3 + $0x2] ss:$0 sm:$0xff] }
  0x81   : > { %1207 = vmatprep.subr.bf16.mxu1 %v1487_v4  ;;  %1128 = vmatprep.mubr.msk.f32.mxu0 %vm1488_vm1, %v1489_v12  ;;  %v1052_v16 = vld [vmem:[%s1813_s3 + $0x3] ss:$0 sm:$0xff] }
  0x82   : > { %1139 = vmatprep.mubr.msk.f32.mxu1 %vm1488_vm1, %v1489_v12 }
  0x83   : > { %1203 = vmatpush3.bf16.msra.mxu0 %v1202_v27  ;;  %v910_v27 = vld [vmem:[#allocation3] sm:$0x3] }
  0x84   : > { %1209 = vmatpush3.bf16.msra.mxu1 %v1208_v28  ;;  %1210 = vmatprep.subr.bf16.mxu0 %v1487_v4 }
  0x85   : > { %1216 = vmatprep.subr.bf16.mxu1 %v1487_v4 }
  0x86   : > { %1129 = vmatmul.mubr.msk.f32.vlgmr.msra.gmra.mrb[2].mxu0 %vm259_vm2, %v1704_v19 }
  0x87   : > { %1140 = vmatmul.mubr.msk.f32.vlgmr.msra.gmra.mrb[2].mxu1 %vm259_vm2, %v1707_v21  ;;  %1212 = vmatpush3.bf16.msra.mxu0 %v1211_v33 }
  0x88   : > { %1218 = vmatpush3.bf16.msra.mxu1 %v1217_v34  ;;  %1213 = vmatprep.subr.bf16.mxu0 %v1487_v4 }
  0x89   : > { %1219 = vmatprep.subr.bf16.mxu1 %v1487_v4  ;;  %1150 = vmatprep.mubr.msk.f32.mxu0 %vm1488_vm1, %v1489_v12 }
  0x8a   : > { %1161 = vmatprep.mubr.msk.f32.mxu1 %vm1488_vm1, %v1489_v12 }
  0x8b   : > { %1215 = vmatpush3.bf16.msra.mxu0 %v1214_v39 }
  0x8c   : > { %1221 = vmatpush3.bf16.msra.mxu1 %v1220_v40  ;;  %1222 = vmatprep.subr.bf16.mxu0 %v1487_v4 }
  0x8d   : > { %1228 = vmatprep.subr.bf16.mxu1 %v1487_v4 }
  0x8e   : > { %1151 = vmatmul.mubr.msk.f32.vlgmr.msra.gmra.mrb[4].mxu0 %vm259_vm2, %v1704_v19 }
  0x8f   : > { %1162 = vmatmul.mubr.msk.f32.vlgmr.msra.gmra.mrb[4].mxu1 %vm259_vm2, %v1707_v21  ;;  %1224 = vmatpush3.bf16.msra.mxu0 %v1223_v45 }
  0x90   : > { %1230 = vmatpush3.bf16.msra.mxu1 %v1229_v46  ;;  %1225 = vmatprep.subr.bf16.mxu0 %v1487_v4 }
  0x91   : > { %1231 = vmatprep.subr.bf16.mxu1 %v1487_v4  ;;  %1172 = vmatprep.mubr.msk.f32.mxu0 %vm1488_vm1, %v1489_v12 }
  0x92   : > { %1183 = vmatprep.mubr.msk.f32.mxu1 %vm1488_vm1, %v1489_v12 }
  0x93   : > { %1227 = vmatpush3.bf16.msra.mxu0 %v1226_v51 }
  0x94   : > { %1233 = vmatpush3.bf16.msra.mxu1 %v1232_v52 }
  0x96   : > { %1173 = vmatmul.mubr.msk.f32.vlgmr.msra.gmra.mrb[6].mxu0 %vm259_vm2, %v1704_v19 }
  0x97   : > { %1184 = vmatmul.mubr.msk.f32.vlgmr.msra.gmra.mrb[6].mxu1 %vm259_vm2, %v1707_v21 }
 0x151   : > { %v329_v53 = vpop.f32.mrb[0].mxu0 }
 0x152   : > { %v402_v54 = vpop.f32.mrb[0].mxu1  ;;  %v1108_v56 = vpop.f32.mrb[1].mxu0 }
 0x153   : > { %v403_v57 = vadd.f32 %v402_v54, %v329_v53  ;;  %v1119_v58 = vpop.f32.mrb[1].mxu1 }
 0x155   : > { %v413_v59 = vadd.f32 %v1038_v55, %v403_v57 }
 0x157   : > { %v1039_v60 = vmul.f32 -1.442695, %v413_v59 }
 0x159   : > { %1307 = vpow2.f32 %v1039_v60  ;;  %v496_v61 = vpop.f32.mrb[2].mxu0 }
 0x15a   : > { %v566_v62 = vpop.f32.mrb[2].mxu1  ;;  %v1130_v0 = vpop.f32.mrb[3].mxu0 }
 0x15b   : > { %v567_v1 = vadd.f32 %v566_v62, %v496_v61  ;;  %v1141_v2 = vpop.f32.mrb[3].mxu1 }
 0x15d   : > { %v578_v3 = vadd.f32 %v1043_v63, %v567_v1 }
 0x15f   : > { %v1044_v4 = vmul.f32 -1.442695, %v578_v3 }
 0x161   : > { %1309 = vpow2.f32 %v1044_v4  ;;  %v661_v5 = vpop.f32.mrb[4].mxu0 }
 0x162   : > { %v731_v6 = vpop.f32.mrb[4].mxu1  ;;  %v1152_v8 = vpop.f32.mrb[5].mxu0 }
 0x163   : > { %v1308_v9 = vpop.eup %1307  ;;  %v732_v10 = vadd.f32 %v731_v6, %v661_v5  ;;  %v1163_v11 = vpop.f32.mrb[5].mxu1 }
 0x164   : > { %v417_v12 = vadd.f32 1.0, %v1308_v9 }
 0x165   : > { %v743_v13 = vadd.f32 %v1048_v7, %v732_v10 }
 0x166   : > { %1311 = vrcp.f32 %v417_v12 }
 0x167   : > { %1313 = vtanh.f32 %v743_v13 }
 0x169   : > { %v821_v14 = vpop.f32.mrb[6].mxu0 }
 0x16a   : > { %v891_v15 = vpop.f32.mrb[6].mxu1  ;;  %v1174_v17 = vpop.f32.mrb[7].mxu0 }
 0x16b   : > { %v1310_v18 = vpop.eup %1309  ;;  %v892_v19 = vadd.f32 %v891_v15, %v821_v14  ;;  %v1185_v20 = vpop.f32.mrb[7].mxu1 }
 0x16c   : > { %v582_v21 = vadd.f32 1.0, %v1310_v18 }
 0x16d   : > { %v903_v22 = vadd.f32 %v1052_v16, %v892_v19 }
 0x16e   : > { %1315 = vrcp.f32 %v582_v21 }
 0x16f   : > { %v1053_v23 = vmul.f32 -1.442695, %v903_v22 }
 0x170   : > { %v1312_v24 = vpop.eup %1311 }
 0x171   : > { %v1314_v25 = vpop.eup %1313  ;;  %1317 = vpow2.f32 %v1053_v23 }
 0x172   : > { %v912_v26 = vmul.f32 %v1314_v25, %v1312_v24 }
 0x178   : > { %v1316_v28 = vpop.eup %1315 }
 0x179   : > { %v911_v29 = vmul.f32 %v1316_v28, %v910_v27 }
 0x17b   : > { %v1318_v30 = vpop.eup %1317  ;;  %v913_v31 = vadd.f32 %v912_v26, %v911_v29 }
 0x17c   : > { %v907_v32 = vadd.f32 1.0, %v1318_v30 }
 0x17d   : > { %1319 = vtanh.f32 %v913_v31  ;;  %917 = vst.msk [vmem:[#allocation3] sm:$0x3] %vm916_vm3, %v913_v31 }
 0x17e   : > { %1321 = vrcp.f32 %v907_v32 }
 0x187   : > { %v1320_v33 = vpop.eup %1319 }
 0x188   : > { %v1322_v34 = vpop.eup %1321 }
 0x189   : > { %v915_v35 = vmul.f32 %v1322_v34, %v1320_v33 }
 0x18b   : > { %918 = vst.msk [vmem:[#allocation2] sm:$0x3] %vm916_vm3, %v915_v35  ;;  %919 = vst.msk [vmem:[%s1692_s23] sm:$0x3] %vm916_vm3, %v915_v35 }
 0x18c   : > { %1422 = shalt.err (!%p1419_p10)
}
 0x18d   : > { %s1423_s29 = scalar_lea.hbm %s1766_s25, 32  ;;  %s1427_s5 = scalar_lea.hbm %s1814_s4, 256 }
 0x18e   : > { %p1424_p13 = scmp.ne.s32.totalorder %s1766_s25, %s1423_s29  ;;  %p1428_p11 = scmp.lt.u32.totalorder %s1766_s25, %s1814_s4 }
 0x18f   : > { %p1429_p8 = scmp.lt.u32.totalorder %s1427_s5, %s1423_s29  ;;  %p1431_p2 = scmp.lt.u32.totalorder %s1423_s29, %s1766_s25 }
 0x190   : > { %p1425_p5 = pnand %p1424_p13, %p1629_p4 }
 0x191   : > { %p1430_p1 = por %p1429_p8, %p1428_p11 }
 0x192   : > { %p1426_p0 = pneg %p1425_p5 }
 0x193   : > { %p1432_p6 = por %p1431_p2, %p1430_p1 }
 0x195   : > { %p1433_p9 = pnand %p1432_p6, %p1426_p0 }
 0x197   : > { %1436 = shalt.err (!%p1433_p9)
}
 0x198   : > { %1244 = dma.vmem_to_hbm [thread:$0]  (%p1629_p4), %s1768_s28, 32, %s1766_s25, %s921_s7  }
 0x199 PF: > { %p1266_p12 = scmp.ge.s32.totalorder %s1479_s18, 2  ;;  %s946_s10 = sand.u32 1, %s1467_s15  }
 0x19a   : > { %p1830_p3 = scmp.ne.s32.totalorder %s1819_s22, 0  ;;  %s947_s24 = scalar_lea.sflag [#allocation6], %s946_s10 }
 0x19c   : > { %p1258_p7 = pnand %p1266_p12, %p1830_p3 }
 0x19e   : > { %1462 = dma.done.wait (!%p1258_p7), %s947_s24, 32  }
 0x19f   : > { %1464 = vsyncadd (!%p1258_p7), %s947_s24, 4294967264  ;;  %p18_p10 = scmp.ge.s32.totalorder %s1619_s9, 10   ;;  %s1831_s15 = smov %s1471_s16 }
 0x1a0   : > { %s1832_s16 = smov %s1475_s17  ;;  %s1833_s17 = smov %s1635_s14 }
 0x1a1   : > { %s1834_s18 = smov %s1619_s9  ;;  %20 = sbr.rel (!%p18_p10) target bundleno = 6 (0x6), region = 102 }
 0x1a8   :  { %952 = vsyncpa [#allocation5], 1 }
 0x1a9   :  { %954 = vsyncpa [#allocation5 + $0x1], 1 }
 0x1aa   :  { %955 = vsyncpa [#allocation8], 1 }
 0x1ab   :  { %956 = vsyncpa [#allocation6], 1 }
 0x1ac   :  { %958 = vsyncpa [#allocation6 + $0x1], 1 }

</bundles_post_ra>
